<compile_context>
chip_gen: v7x
topology: tpu7x:2x2x1
jax: 0.10.0
libtpu: 0.0.40
codegen_flags: <defaults>
</compile_context>

<pallas_src>
import numpy as np
import jax
import jax.numpy as jnp
from jax import lax
from jax.experimental import pallas as pl
from jax.experimental.pallas import tpu as pltpu


# ----------------------------------------------------------------------------
# Kernel: one batch tile -> Q values (lane-padded to 128)
# ----------------------------------------------------------------------------
def _dueling_dqn_kernel(x_ref, w1_ref, w2_ref, wh_ref, bias_ref, q_ref):
    f32 = jnp.float32

    # packed biases (128-aligned segments): [0:288]=conv1, [384:640]=conv2,
    # [640:768]=heads (cols 0..3 = advantage bias, col 4 = value bias).
    b1 = bias_ref[:, 0:288]
    b2 = bias_ref[:, 384:640]
    bh = bias_ref[:, 640:768]

    # conv1 (1->32, k=2) as a single matmul over the flattened 4x4 input.
    h1 = jnp.dot(x_ref[...], w1_ref[...], preferred_element_type=f32)
    h1 = jnp.maximum(h1 + b1, 0.0)                      # (TB, 9*32)

    # conv2 (32->64, k=2) as a single matmul (K=288, N=256 fills the MXU).
    h2 = jnp.dot(h1, w2_ref[...], preferred_element_type=f32)
    h2 = jnp.maximum(h2 + b2, 0.0)                      # (TB, 4*64)

    # fused value/advantage heads: cols 0..3 = advantage, col 4 = value.
    head = jnp.dot(h2, wh_ref[...], preferred_element_type=f32) + bh  # (TB,128)

    adv = head[:, 0:4]
    val = head[:, 4:5]
    adv_mean = jnp.sum(adv, axis=1, keepdims=True) * 0.25

    # Q = V + A - mean(A); cols 0..3 are valid, the rest are lane padding
    # (sliced off in the wrapper).  Lane-dense store, no masked vst.
    q_ref[...] = (head + val - adv_mean).astype(q_ref.dtype)


# ----------------------------------------------------------------------------
# Wrapper: constant weight repacking + pallas_call
# ----------------------------------------------------------------------------
def _pack_weights(params):
    w1, b1 = params["conv1"]          # (32,1,2,2), (32,)
    w2, b2 = params["conv2"]          # (64,32,2,2), (64,)
    wv, bv = params["fc_value"]       # (1,256), (1,)
    wa, ba = params["fc_advantage"]   # (4,256), (4,)

    # conv1 -> (16, 9*32):  W1[(i+di)*4+(j+dj), (i*3+j)*32 + c] = w1[c,0,di,dj]
    w1m = jnp.zeros((16, 288), jnp.float32)
    for i in range(3):
        for j in range(3):
            col0 = (i * 3 + j) * 32
            for di in range(2):
                for dj in range(2):
                    pix = (i + di) * 4 + (j + dj)
                    w1m = w1m.at[pix, col0:col0 + 32].set(w1[:, 0, di, dj])

    # conv2 -> (9*32, 4*64): W2[p*32+c1, q*64+c2] = w2[c2,c1,di,dj],
    # with q = oi*2+oj and p = (oi+di)*3 + (oj+dj).
    w2m = jnp.zeros((288, 256), jnp.float32)
    for oi in range(2):
        for oj in range(2):
            q = oi * 2 + oj
            for di in range(2):
                for dj in range(2):
                    p = (oi + di) * 3 + (oj + dj)
                    w2m = w2m.at[p * 32:(p + 1) * 32,
                                 q * 64:(q + 1) * 64].set(w2[:, :, di, dj].T)

    # fused heads -> (256, 128).  Our feature order is f = q*64 + c2; PyTorch
    # flatten order is k = c2*4 + q, so repack columns accordingly.
    wa_r = wa.reshape(4, 64, 4).transpose(2, 1, 0).reshape(256, 4)   # [q*64+c2, a]
    wv_r = wv.reshape(1, 64, 4).transpose(2, 1, 0).reshape(256, 1)   # [q*64+c2, 0]
    whm = jnp.concatenate(
        [wa_r, wv_r, jnp.zeros((256, 123), jnp.float32)], axis=1)    # (256,128)

    # packed biases (1, 768) with 128-aligned segments.
    bias_pack = jnp.concatenate([
        jnp.tile(b1, 9),                       # [0:288]   conv1 bias per position
        jnp.zeros((96,), jnp.float32),         # pad to 384
        jnp.tile(b2, 4),                       # [384:640] conv2 bias per position
        ba,                                    # [640:644] advantage bias
        bv,                                    # [644]     value bias
        jnp.zeros((123,), jnp.float32),        # pad to 768
    ]).reshape(1, 768)

    return w1m, w2m, whm, bias_pack


def dueling_dqn_forward(x, params, max_tile_b=512):
    """x: (B, 1, 4, 4) float32, NCHW (PyTorch convention). Returns (B, 4)."""
    batch = x.shape[0]
    w1m, w2m, whm, bias_pack = _pack_weights(params)

    # flatten input to (B, 16); row order h*4 + w matches NCHW.
    x_flat = x.reshape(batch, 16).astype(jnp.float32)

    # batch tiling: multiple of 8 rows per tile, pad batch to a tile multiple.
    tb = min(max_tile_b, ((batch + 7) // 8) * 8)
    tb = max(8, ((tb + 7) // 8) * 8)
    bp = ((batch + tb - 1) // tb) * tb
    if bp != batch:
        x_flat = jnp.pad(x_flat, ((0, bp - batch), (0, 0)))

    q_padded = pl.pallas_call(
        _dueling_dqn_kernel,
        out_shape=jax.ShapeDtypeStruct((bp, 128), jnp.float32),
        grid=(bp // tb,),
        in_specs=[
            pl.BlockSpec((tb, 16), lambda i: (i, 0)),     # input tile
            pl.BlockSpec((16, 288), lambda i: (0, 0)),    # conv1 weights
            pl.BlockSpec((288, 256), lambda i: (0, 0)),   # conv2 weights
            pl.BlockSpec((256, 128), lambda i: (0, 0)),   # fused head weights
            pl.BlockSpec((1, 768), lambda i: (0, 0)),     # packed biases
        ],
        out_specs=pl.BlockSpec((tb, 128), lambda i: (i, 0)),
        compiler_params=pltpu.CompilerParams(
            dimension_semantics=("parallel",),
            vmem_limit_bytes=32 * 1024 * 1024,
        ),
    )(x_flat, w1m, w2m, whm, bias_pack)

    return q_padded[:batch, :4]


# ----------------------------------------------------------------------------
# Pure-JAX reference (replica of the PyTorch forward) for verification
# ----------------------------------------------------------------------------
def _reference_forward(x, params):
    w1, b1 = params["conv1"]
    w2, b2 = params["conv2"]
    wv, bv = params["fc_value"]
    wa, ba = params["fc_advantage"]
    dn = ('NCHW', 'OIHW', 'NCHW')
    y = lax.conv_general_dilated(x, w1, (1, 1), 'VALID', dimension_numbers=dn)
    y = jnp.maximum(y + b1[None, :, None, None], 0.0)
    y = lax.conv_general_dilated(y, w2, (1, 1), 'VALID', dimension_numbers=dn)
    y = jnp.maximum(y + b2[None, :, None, None], 0.0)
    feat = y.reshape(x.shape[0], -1)                     # NCHW flatten
    val = feat @ wv.T + bv
    adv = feat @ wa.T + ba
    return val + adv - adv.mean(axis=1, keepdims=True)


if __name__ == "__main__":
    key = jax.random.PRNGKey(0)
    ks = jax.random.split(key, 11)
    x = jax.random.normal(ks[0], (2, 1, 4, 4), dtype=jnp.float32)

    params = {
        "conv1": (0.10 * jax.random.normal(ks[1], (32, 1, 2, 2), jnp.float32),
                  0.10 * jax.random.normal(ks[2], (32,), jnp.float32)),
        "conv2": (0.05 * jax.random.normal(ks[3], (64, 32, 2, 2), jnp.float32),
                  0.05 * jax.random.normal(ks[4], (64,), jnp.float32)),
        # conv3 is defined in the PyTorch __init__ but never used in forward()
        "conv3": (0.05 * jax.random.normal(ks[5], (64, 64, 2, 2), jnp.float32),
                  0.05 * jax.random.normal(ks[6], (64,), jnp.float32)),
        "fc_value": (0.05 * jax.random.normal(ks[7], (1, 256), jnp.float32),
                     0.05 * jax.random.normal(ks[8], (1,), jnp.float32)),
        "fc_advantage": (0.05 * jax.random.normal(ks[9], (4, 256), jnp.float32),
                         0.05 * jax.random.normal(ks[10], (4,), jnp.float32)),
    }

    q = dueling_dqn_forward(x, params)
    jax.block_until_ready(q)

    q_ref = _reference_forward(x, params)
    np.testing.assert_allclose(np.asarray(q), np.asarray(q_ref),
                               rtol=1e-2, atol=1e-2)
    print("KERNEL_OK")
</pallas_src>

<mosaic_0001>
module attributes {stable_mosaic.version = 11 : i64} {
  func.func @_dueling_dqn_kernel(%arg0: i32, %arg1: memref<8x16xf32, #tpu.memory_space<vmem>>, %arg2: memref<16x288xf32, #tpu.memory_space<vmem>>, %arg3: memref<288x256xf32, #tpu.memory_space<vmem>>, %arg4: memref<256x128xf32, #tpu.memory_space<vmem>>, %arg5: memref<1x768xf32, #tpu.memory_space<vmem>>, %arg6: memref<8x128xf32, #tpu.memory_space<vmem>>) attributes {dimension_semantics = [#tpu.dimension_semantics<parallel>], iteration_bounds = array<i64: 1>, scalar_prefetch = 0 : i64, scratch_operands = 0 : i64, tpu.core_type = #tpu.core_type<tc>, window_params = [{transform_indices = @transform_0, window_bounds = array<i64: 8, 16>}, {pipeline_mode = #tpu.pipeline_mode<synchronous>, transform_indices = @transform_1, window_bounds = array<i64: 16, 288>}, {pipeline_mode = #tpu.pipeline_mode<synchronous>, transform_indices = @transform_2, window_bounds = array<i64: 288, 256>}, {pipeline_mode = #tpu.pipeline_mode<synchronous>, transform_indices = @transform_3, window_bounds = array<i64: 256, 128>}, {pipeline_mode = #tpu.pipeline_mode<synchronous>, transform_indices = @transform_4, window_bounds = array<i64: 1, 768>}, {transform_indices = @transform_5, window_bounds = array<i64: 8, 128>}]} {
    %c0 = arith.constant 0 : index
    %c0_0 = arith.constant 0 : index
    %0 = vector.load %arg5[%c0, %c0_0] : memref<1x768xf32, #tpu.memory_space<vmem>>, vector<1x288xf32>
    %c0_1 = arith.constant 0 : index
    %c384 = arith.constant 384 : index
    %1 = vector.load %arg5[%c0_1, %c384] : memref<1x768xf32, #tpu.memory_space<vmem>>, vector<1x256xf32>
    %c0_2 = arith.constant 0 : index
    %c640 = arith.constant 640 : index
    %2 = vector.load %arg5[%c0_2, %c640] : memref<1x768xf32, #tpu.memory_space<vmem>>, vector<1x128xf32>
    %c0_3 = arith.constant 0 : index
    %c0_4 = arith.constant 0 : index
    %3 = vector.load %arg1[%c0_3, %c0_4] : memref<8x16xf32, #tpu.memory_space<vmem>>, vector<8x16xf32>
    %c0_5 = arith.constant 0 : index
    %c0_6 = arith.constant 0 : index
    %4 = vector.load %arg2[%c0_5, %c0_6] : memref<16x288xf32, #tpu.memory_space<vmem>>, vector<16x288xf32>
    %cst = arith.constant dense<0.000000e+00> : vector<8x288xf32>
    %5 = tpu.matmul %3, %4, %cst {dimension_numbers = #tpu.dot_dimension_numbers<[1], [0], [0], [1], [0, 0, 1, 1], [], []>} : vector<8x16xf32>, vector<16x288xf32>, vector<8x288xf32> -> vector<8x288xf32>
    %6 = vector.broadcast %0 : vector<1x288xf32> to vector<8x288xf32>
    %7 = arith.addf %5, %6 : vector<8x288xf32>
    %cst_7 = arith.constant 0.000000e+00 : f32
    %8 = vector.broadcast %cst_7 : f32 to vector<8x288xf32>
    %9 = arith.maximumf %7, %8 : vector<8x288xf32>
    %c0_8 = arith.constant 0 : index
    %c0_9 = arith.constant 0 : index
    %10 = vector.load %arg3[%c0_8, %c0_9] : memref<288x256xf32, #tpu.memory_space<vmem>>, vector<288x256xf32>
    %cst_10 = arith.constant dense<0.000000e+00> : vector<8x256xf32>
    %11 = tpu.matmul %9, %10, %cst_10 {dimension_numbers = #tpu.dot_dimension_numbers<[1], [0], [0], [1], [0, 0, 1, 1], [], []>} : vector<8x288xf32>, vector<288x256xf32>, vector<8x256xf32> -> vector<8x256xf32>
    %12 = vector.broadcast %1 : vector<1x256xf32> to vector<8x256xf32>
    %13 = arith.addf %11, %12 : vector<8x256xf32>
    %cst_11 = arith.constant 0.000000e+00 : f32
    %14 = vector.broadcast %cst_11 : f32 to vector<8x256xf32>
    %15 = arith.maximumf %13, %14 : vector<8x256xf32>
    %c0_12 = arith.constant 0 : index
    %c0_13 = arith.constant 0 : index
    %16 = vector.load %arg4[%c0_12, %c0_13] : memref<256x128xf32, #tpu.memory_space<vmem>>, vector<256x128xf32>
    %cst_14 = arith.constant dense<0.000000e+00> : vector<8x128xf32>
    %17 = tpu.matmul %15, %16, %cst_14 {dimension_numbers = #tpu.dot_dimension_numbers<[1], [0], [0], [1], [0, 0, 1, 1], [], []>} : vector<8x256xf32>, vector<256x128xf32>, vector<8x128xf32> -> vector<8x128xf32>
    %18 = vector.broadcast %2 : vector<1x128xf32> to vector<8x128xf32>
    %19 = arith.addf %17, %18 : vector<8x128xf32>
    %20 = vector.extract_strided_slice %19 {offsets = [0, 0], sizes = [8, 4], strides = [1, 1]} : vector<8x128xf32> to vector<8x4xf32>
    %21 = vector.extract_strided_slice %19 {offsets = [0, 4], sizes = [8, 1], strides = [1, 1]} : vector<8x128xf32> to vector<8x1xf32>
    %cst_15 = arith.constant dense<0.000000e+00> : vector<8xf32>
    %22 = vector.multi_reduction <add>, %20, %cst_15 [1] : vector<8x4xf32> to vector<8xf32>
    %23 = vector.shape_cast %22 : vector<8xf32> to vector<8x1xf32>
    %cst_16 = arith.constant 2.500000e-01 : f32
    %24 = vector.broadcast %cst_16 : f32 to vector<8x1xf32>
    %25 = arith.mulf %23, %24 : vector<8x1xf32>
    %26 = vector.broadcast %21 : vector<8x1xf32> to vector<8x128xf32>
    %27 = arith.addf %19, %26 : vector<8x128xf32>
    %28 = vector.broadcast %25 : vector<8x1xf32> to vector<8x128xf32>
    %29 = arith.subf %27, %28 : vector<8x128xf32>
    %c0_17 = arith.constant 0 : index
    %c0_18 = arith.constant 0 : index
    %30 = vector.load %arg6[%c0_17, %c0_18] : memref<8x128xf32, #tpu.memory_space<vmem>>, vector<8x128xf32>
    tpu.vector_store %arg6[%c0_17, %c0_18], %29 {strides = array<i32>} : memref<8x128xf32, #tpu.memory_space<vmem>>, vector<8x128xf32>,
    return
  }
  func.func @transform_0(%arg0: i32) -> (i32, i32) {
    %c0_i32 = arith.constant 0 : i32
    %c0_i32_0 = arith.constant 0 : i32
    return %arg0, %c0_i32 : i32, i32
  }
  func.func @transform_1(%arg0: i32) -> (i32, i32) {
    %c0_i32 = arith.constant 0 : i32
    %c0_i32_0 = arith.constant 0 : i32
    %c0_i32_1 = arith.constant 0 : i32
    return %c0_i32, %c0_i32_0 : i32, i32
  }
  func.func @transform_2(%arg0: i32) -> (i32, i32) {
    %c0_i32 = arith.constant 0 : i32
    %c0_i32_0 = arith.constant 0 : i32
    %c0_i32_1 = arith.constant 0 : i32
    return %c0_i32, %c0_i32_0 : i32, i32
  }
  func.func @transform_3(%arg0: i32) -> (i32, i32) {
    %c0_i32 = arith.constant 0 : i32
    %c0_i32_0 = arith.constant 0 : i32
    %c0_i32_1 = arith.constant 0 : i32
    return %c0_i32, %c0_i32_0 : i32, i32
  }
  func.func @transform_4(%arg0: i32) -> (i32, i32) {
    %c0_i32 = arith.constant 0 : i32
    %c0_i32_0 = arith.constant 0 : i32
    %c0_i32_1 = arith.constant 0 : i32
    return %c0_i32, %c0_i32_0 : i32, i32
  }
  func.func @transform_5(%arg0: i32) -> (i32, i32) {
    %c0_i32 = arith.constant 0 : i32
    %c0_i32_0 = arith.constant 0 : i32
    return %arg0, %c0_i32 : i32, i32
  }
}

</mosaic_0001>

<bundles_post_ra>
// kernel: tpu_custom_call.1
= control target key start
LH: loop header
LB: loop body
LE: loop exit
PB: predicated region body
PF: predicated region fallthrough
CT: control target
= control target key end

     0   :  { %10 = vsyncpa [#allocation3], 0  ;;  %s1044_s0 = inlined_call_operand.hbm [shape: f32[8,16], index: 0, kind: input, shape index: {}]   ;;  %s1045_s1 = inlined_call_operand.hbm [shape: f32[16,288], index: 1, kind: input, shape index: {}]   ;;  %s1046_s2 = inlined_call_operand.hbm [shape: f32[288,256], index: 2, kind: input, shape index: {}]   ;;  %s1047_s3 = inlined_call_operand.hbm [shape: f32[256,128], index: 3, kind: input, shape index: {}]   ;;  %s1048_s4 = inlined_call_operand.vmem [shape: f32[1,768], index: 4, kind: input, shape index: {}]   ;;  %s1049_s5 = inlined_call_operand.hbm [shape: f32[8,128], index: 5, kind: output, shape index: {}]  }
   0x1   :  { %11 = vsyncpa [#allocation6], 0 }
   0x2   :  { %12 = vsyncpa [#allocation9], 0 }
   0x3   :  { %13 = vsyncpa [#allocation4], 0  ;;  %s915_s18 = smov [#allocation5]   ;;  %s797_s22 = scalar_lea.hbm %s1045_s1, 768 }
   0x4   :  { %s29_s19 = sshll.u32 %s915_s18, 4  ;;  %p798_p0 = scmp.ne.s32.totalorder %s1045_s1, %s797_s22  ;;  %s30_s19 = int_to_ptr.vmem [resolvable:$true] %s29_s19 }
   0x5   :  { %p801_p1 = scmp.lt.u32.totalorder %s797_s22, %s1045_s1 }
   0x7   :  { %p803_p2 = pnand %p801_p1, %p798_p0 }
   0x9   :  { %806 = shalt.err (!%p803_p2)
}
   0xa   :  { %s807_s27 = scalar_lea.vmem %s30_s19, 768  ;;  %p812_p4 = scmp.lt.s32.totalorder %s30_s19, %s30_s19 }
   0xb   :  { %p808_p3 = scmp.ne.s32.totalorder %s30_s19, %s807_s27  ;;  %p813_p5 = scmp.lt.s32.totalorder %s807_s27, %s807_s27 }
   0xd   :  { %p814_p6 = por %p813_p5, %p812_p4 }
   0xf   :  { %p815_p7 = pnand %p814_p6, %p808_p3 }
  0x11   :  { %818 = shalt.err (!%p815_p7)
}
  0x12   :  { %s916_s28 = smov 384   ;;  %s917_s29 = smov 24  }
  0x13   :  { %35 = dma.hbm_to_vmem [thread:$0]  %s1045_s1, 768, %s30_s19, [#allocation6], %s916_s28, %s916_s28, %s917_s29  }
  0x14   :  { %s918_s7 = smov [#allocation2]   ;;  %s919_s9 = smov [#allocation7]  }
  0x15   :  { %s20_s8 = sshll.u32 %s918_s7, 4  ;;  %s41_s10 = sshll.u32 %s919_s9, 4  ;;  %s21_s8 = int_to_ptr.vmem [resolvable:$true] %s20_s8  ;;  %s42_s10 = int_to_ptr.vmem [resolvable:$true] %s41_s10 }
  0x16   :  { %s819_s13 = scalar_lea.hbm %s1044_s0, 128 }
  0x17   :  { %p820_p8 = scmp.ne.s32.totalorder %s1044_s0, %s819_s13  ;;  %p823_p9 = scmp.lt.u32.totalorder %s819_s13, %s1044_s0 }
  0x19   :  { %p825_p10 = pnand %p823_p9, %p820_p8 }
  0x1b   :  { %828 = shalt.err (!%p825_p10)
}
  0x1c   :  { %s829_s1 = scalar_lea.vmem %s21_s8, 128  ;;  %p834_p12 = scmp.lt.s32.totalorder %s21_s8, %s21_s8 }
  0x1d   :  { %p830_p11 = scmp.ne.s32.totalorder %s21_s8, %s829_s1  ;;  %p835_p13 = scmp.lt.s32.totalorder %s829_s1, %s829_s1 }
  0x1f   :  { %p836_p0 = por %p835_p13, %p834_p12 }
  0x21   :  { %p837_p1 = pnand %p836_p0, %p830_p11 }
  0x23   :  { %840 = shalt.err (!%p837_p1)
}
  0x24   :  { %23 = dma.hbm_to_vmem [thread:$0]  %s1044_s0, 128, %s21_s8, [#allocation3]  }
  0x25   :  { %s841_s22 = scalar_lea.hbm %s1046_s2, 9216 }
  0x26   :  { %p842_p2 = scmp.ne.s32.totalorder %s1046_s2, %s841_s22  ;;  %p845_p3 = scmp.lt.u32.totalorder %s841_s22, %s1046_s2 }
  0x28   :  { %p847_p4 = pnand %p845_p3, %p842_p2 }
  0x2a   :  { %850 = shalt.err (!%p847_p4)
}
  0x2b   :  { %s851_s27 = scalar_lea.vmem %s42_s10, 9216  ;;  %p856_p6 = scmp.lt.s32.totalorder %s42_s10, %s42_s10 }
  0x2c   :  { %p852_p5 = scmp.ne.s32.totalorder %s42_s10, %s851_s27  ;;  %p857_p7 = scmp.lt.s32.totalorder %s851_s27, %s851_s27 }
  0x2e   :  { %p858_p8 = por %p857_p7, %p856_p6 }
  0x30   :  { %p859_p9 = pnand %p858_p8, %p852_p5 }
  0x32   :  { %862 = shalt.err (!%p859_p9)
}
  0x33   :  { %s920_s0 = smov 256   ;;  %s921_s28 = smov 16  }
  0x34   :  { %47 = dma.hbm_to_vmem [thread:$0]  %s1046_s2, 9216, %s42_s10, [#allocation6], %s920_s0, %s920_s0, %s921_s28  }
  0x35   :  { %s922_s6 = smov [#allocation8]   ;;  %s863_s11 = scalar_lea.hbm %s1047_s3, 4096 }
  0x36   :  { %s53_s7 = sshll.u32 %s922_s6, 4  ;;  %p864_p10 = scmp.ne.s32.totalorder %s1047_s3, %s863_s11  ;;  %s54_s7 = int_to_ptr.vmem [resolvable:$true] %s53_s7 }
  0x37   :  { %p867_p11 = scmp.lt.u32.totalorder %s863_s11, %s1047_s3 }
  0x39   :  { %p869_p12 = pnand %p867_p11, %p864_p10 }
  0x3b   :  { %872 = shalt.err (!%p869_p12)
}
  0x3c   :  { %s873_s16 = scalar_lea.vmem %s54_s7, 4096  ;;  %p878_p0 = scmp.lt.s32.totalorder %s54_s7, %s54_s7 }
  0x3d   :  { %p874_p13 = scmp.ne.s32.totalorder %s54_s7, %s873_s16  ;;  %p879_p1 = scmp.lt.s32.totalorder %s873_s16, %s873_s16 }
  0x3f   :  { %p880_p2 = por %p879_p1, %p878_p0 }
  0x41   :  { %p881_p3 = pnand %p880_p2, %p874_p13 }
  0x43   :  { %884 = shalt.err (!%p881_p3)
}
  0x44   :  { %s923_s2 = smov 128   ;;  %s924_s10 = smov 8  }
  0x45   :  { %59 = dma.hbm_to_vmem [thread:$0]  %s1047_s3, 4096, %s54_s7, [#allocation9], %s923_s2, %s923_s2, %s924_s10  }
  0x46   :  { %907 = dma.done.wait [#allocation3], 128  }
  0x47   :  { %908 = vsyncadd [#allocation3], 4294967168 }
  0x48   :  { %909 = dma.done.wait [#allocation6], 9984  }
  0x49   :  { %910 = vsyncadd [#allocation6], 4294957312 }
  0x4a   :  { %911 = dma.done.wait [#allocation9], 4096  }
  0x4b   :  { %912 = vsyncadd [#allocation9], 4294963200  ;;  %v925_v0 = vmov 0.0   ;;  %v79_v1 = vld [vmem:[#allocation5 + $0x8] sm:$0xff]  ;;  %v82_v2 = vld [vmem:[#allocation5 + $0x20] sm:$0xff]  ;;  %vm100_vm0 = vcmask 130048  }
  0x4c   :  { %168 = vmatprep.mubr.f32.mxu1 %v925_v0  ;;  %v78_v3 = vld [vmem:[#allocation5] sm:$0xff]  ;;  %v666_v4 = vpack.c.bf16 %v82_v2, %v79_v1  ;;  %v81_v5 = vld [vmem:[#allocation5 + $0x18] sm:$0xff]  ;;  %v80_v6 = vld [vmem:[#allocation5 + $0x10] sm:$0xff]  ;;  %v926_v21 = vmov 0.0|0.0   ;;  %vm927_vm1 = vmmov 0   ;;  %vm331_vm2 = vcmask 261120  }
  0x4d   :  { %v668_v7 = vpack.c.bf16 %v81_v5, %v78_v3  ;;  %v77_v8 = vld [vmem:[#allocation2] sm:$0xff]  ;;  %v83_v9 = vld [vmem:[#allocation5 + $0x28] sm:$0xff]  ;;  %v248_v13 = vld [vmem:[#allocation7] sm:$0xff]  ;;  %vm587_vm3 = vcmask 31744   ;;  %s929_s23 = smov [#allocation10]  }
  0x4e   :  { %v249_v10 = vld [vmem:[#allocation7 + $0x8] sm:$0xff]  ;;  %v251_v11 = vld [vmem:[#allocation7 + $0x18] sm:$0xff]  ;;  %667 = vmatprep.subr.bf16.mxu1 %v666_v4  ;;  %v250_v14 = vld [vmem:[#allocation7 + $0x10] sm:$0xff]  ;;  %v671_v16 = vpack.c.bf16 %v83_v9, %v80_v6  ;;  %s606_s24 = sshll.u32 %s929_s23, 4  ;;  %s607_s24 = int_to_ptr.vmem [resolvable:$true] %s606_s24 }
  0x4f   :  { %v673_v12 = vpack.c.bf16 %v251_v11, %v249_v10  ;;  %v253_v15 = vld [vmem:[#allocation7 + $0x28] sm:$0xff]  ;;  %669 = vmatpush1.bf16.msra.mxu1 %v668_v7  ;;  %v675_v17 = vpack.c.bf16 %v250_v14, %v248_v13  ;;  %v255_v18 = vld [vmem:[#allocation7 + $0x38] sm:$0xff]  ;;  %v252_v19 = vld [vmem:[#allocation7 + $0x20] sm:$0xff]  ;;  %s885_s25 = scalar_lea.vmem %s607_s24, 128  ;;  %p890_p5 = scmp.lt.s32.totalorder %s607_s24, %s607_s24 }
  0x50   :  { %v254_v20 = vld [vmem:[#allocation7 + $0x30] sm:$0xff]  ;;  %670 = vmatprep.subr.bf16.mxu1 %v926_v21  ;;  %v677_v22 = vpack.c.bf16 %v255_v18, %v253_v15  ;;  %v257_v23 = vld [vmem:[#allocation7 + $0x48] sm:$0xff]  ;;  %v259_v24 = vld [vmem:[#allocation7 + $0x58] sm:$0xff]  ;;  %p886_p4 = scmp.ne.s32.totalorder %s607_s24, %s885_s25  ;;  %p891_p6 = scmp.lt.s32.totalorder %s885_s25, %s885_s25 }
  0x51   :  { %674 = vmatprep.subr.bf16.mxu0 %v673_v12  ;;  %v679_v25 = vpack.c.bf16 %v254_v20, %v252_v19  ;;  %v681_v26 = vpack.c.bf16 %v259_v24, %v257_v23  ;;  %v256_v27 = vld [vmem:[#allocation7 + $0x40] sm:$0xff]  ;;  %v258_v28 = vld [vmem:[#allocation7 + $0x50] sm:$0xff]  ;;  %v261_v29 = vld [vmem:[#allocation7 + $0x68] sm:$0xff] }
  0x52   :  { %676 = vmatpush1.bf16.msra.mxu0 %v675_v17  ;;  %617 = vmatmul.mubr.msk.f32.vlgmr.msra.gmra.mrb[0].mxu1 %vm100_vm0, %v77_v8  ;;  %v263_v30 = vld [vmem:[#allocation7 + $0x78] sm:$0xff]  ;;  %v683_v31 = vpack.c.bf16 %v258_v28, %v256_v27  ;;  %v260_v33 = vld [vmem:[#allocation7 + $0x60] sm:$0xff]  ;;  %v262_v34 = vld [vmem:[#allocation7 + $0x70] sm:$0xff]  ;;  %p892_p7 = por %p891_p6, %p890_p5 }
  0x53   :  { %678 = vmatprep.subr.bf16.mxu0 %v677_v22  ;;  %672 = vmatpush3.bf16.msra.mxu1 %v671_v16  ;;  %v685_v32 = vpack.c.bf16 %v263_v30, %v261_v29  ;;  %v265_v35 = vld [vmem:[#allocation7 + $0x88] sm:$0xff]  ;;  %v267_v36 = vld [vmem:[#allocation7 + $0x98] sm:$0xff]  ;;  %v687_v37 = vpack.c.bf16 %v262_v34, %v260_v33  ;;  %v264_v39 = vld [vmem:[#allocation7 + $0x80] sm:$0xff] }
  0x54   :  { %663 = vmatprep.mubr.msk.f32.mxu1 %vm927_vm1, %v925_v0  ;;  %v689_v38 = vpack.c.bf16 %v267_v36, %v265_v35  ;;  %v266_v40 = vld [vmem:[#allocation7 + $0x90] sm:$0xff]  ;;  %v269_v41 = vld [vmem:[#allocation7 + $0xa8] sm:$0xff]  ;;  %v271_v42 = vld [vmem:[#allocation7 + $0xb8] sm:$0xff]  ;;  %p893_p8 = pnand %p892_p7, %p886_p4 }
  0x55   :  { %v691_v43 = vpack.c.bf16 %v266_v40, %v264_v39  ;;  %v693_v44 = vpack.c.bf16 %v271_v42, %v269_v41  ;;  %v268_v45 = vld [vmem:[#allocation7 + $0xa0] sm:$0xff]  ;;  %v270_v46 = vld [vmem:[#allocation7 + $0xb0] sm:$0xff]  ;;  %v273_v47 = vld [vmem:[#allocation7 + $0xc8] sm:$0xff] }
  0x56   :  { %680 = vmatpush1.bf16.msra.mxu0 %v679_v25  ;;  %664 = vmatmul.mubr.msk.f32.vlgmr.msra.gmra.mrb[2].mxu1 %vm100_vm0, %v77_v8  ;;  %v275_v48 = vld [vmem:[#allocation7 + $0xd8] sm:$0xff]  ;;  %v695_v49 = vpack.c.bf16 %v270_v46, %v268_v45  ;;  %v272_v51 = vld [vmem:[#allocation7 + $0xc0] sm:$0xff]  ;;  %v274_v52 = vld [vmem:[#allocation7 + $0xd0] sm:$0xff] }
  0x57   :  { %682 = vmatprep.subr.bf16.mxu0 %v681_v26  ;;  %470 = vmatprep.mubr.f32.mxu1 %v925_v0  ;;  %v697_v50 = vpack.c.bf16 %v275_v48, %v273_v47  ;;  %v277_v53 = vld [vmem:[#allocation7 + $0xe8] sm:$0xff]  ;;  %v279_v54 = vld [vmem:[#allocation7 + $0xf8] sm:$0xff]  ;;  %v699_v55 = vpack.c.bf16 %v274_v52, %v272_v51  ;;  %v276_v57 = vld [vmem:[#allocation7 + $0xe0] sm:$0xff] }
  0x58   :  { %v701_v56 = vpack.c.bf16 %v279_v54, %v277_v53  ;;  %v278_v58 = vld [vmem:[#allocation7 + $0xf0] sm:$0xff]  ;;  %v281_v59 = vld [vmem:[#allocation7 + $0x108] sm:$0xff]  ;;  %v283_v60 = vld [vmem:[#allocation7 + $0x118] sm:$0xff] }
  0x59   :  { %v703_v61 = vpack.c.bf16 %v278_v58, %v276_v57  ;;  %v705_v62 = vpack.c.bf16 %v283_v60, %v281_v59  ;;  %v280_v63 = vld [vmem:[#allocation7 + $0x100] sm:$0xff]  ;;  %v282_v0 = vld [vmem:[#allocation7 + $0x110] sm:$0xff]  ;;  %v285_v1 = vld [vmem:[#allocation7 + $0x128] sm:$0xff]  ;;  %v85_v59 = vlaneseq }
  0x5a   :  { %684 = vmatpush1.bf16.msra.mxu0 %v683_v31  ;;  %v287_v2 = vld [vmem:[#allocation7 + $0x138] sm:$0xff]  ;;  %v707_v3 = vpack.c.bf16 %v282_v0, %v280_v63  ;;  %v284_v5 = vld [vmem:[#allocation7 + $0x120] sm:$0xff]  ;;  %v286_v6 = vld [vmem:[#allocation7 + $0x130] sm:$0xff] }
  0x5b   :  { %686 = vmatprep.subr.bf16.mxu0 %v685_v32  ;;  %v709_v4 = vpack.c.bf16 %v287_v2, %v285_v1  ;;  %v289_v7 = vld [vmem:[#allocation7 + $0x148] sm:$0xff]  ;;  %v291_v8 = vld [vmem:[#allocation7 + $0x158] sm:$0xff]  ;;  %v711_v9 = vpack.c.bf16 %v286_v6, %v284_v5  ;;  %v288_v11 = vld [vmem:[#allocation7 + $0x140] sm:$0xff]  ;;  %v1010_v60 = vshrl.u32 %v85_v59, 7 }
  0x5c   :  { %v713_v10 = vpack.c.bf16 %v291_v8, %v289_v7  ;;  %v290_v12 = vld [vmem:[#allocation7 + $0x150] sm:$0xff]  ;;  %v293_v13 = vld [vmem:[#allocation7 + $0x168] sm:$0xff]  ;;  %v295_v14 = vld [vmem:[#allocation7 + $0x178] sm:$0xff] }
  0x5d   :  { %v715_v15 = vpack.c.bf16 %v290_v12, %v288_v11  ;;  %v717_v16 = vpack.c.bf16 %v295_v14, %v293_v13  ;;  %v292_v17 = vld [vmem:[#allocation7 + $0x160] sm:$0xff]  ;;  %v294_v18 = vld [vmem:[#allocation7 + $0x170] sm:$0xff]  ;;  %v297_v19 = vld [vmem:[#allocation7 + $0x188] sm:$0xff]  ;;  %v91_v63 = vsub.s32 1, %v1010_v60  ;;  %v95_v1 = vsub.s32 2, %v1010_v60 }
  0x5e   :  { %688 = vmatpush1.bf16.msra.mxu0 %v687_v37  ;;  %v299_v20 = vld [vmem:[#allocation7 + $0x198] sm:$0xff]  ;;  %v719_v21 = vpack.c.bf16 %v294_v18, %v292_v17  ;;  %v296_v23 = vld [vmem:[#allocation7 + $0x180] sm:$0xff]  ;;  %v298_v24 = vld [vmem:[#allocation7 + $0x190] sm:$0xff] }
  0x5f   :  { %690 = vmatprep.subr.bf16.mxu0 %v689_v38  ;;  %v721_v22 = vpack.c.bf16 %v299_v20, %v297_v19  ;;  %v301_v25 = vld [vmem:[#allocation7 + $0x1a8] sm:$0xff]  ;;  %v303_v26 = vld [vmem:[#allocation7 + $0x1b8] sm:$0xff]  ;;  %v723_v27 = vpack.c.bf16 %v298_v24, %v296_v23  ;;  %v300_v29 = vld [vmem:[#allocation7 + $0x1a0] sm:$0xff] }
  0x60   :  { %v725_v28 = vpack.c.bf16 %v303_v26, %v301_v25  ;;  %v302_v30 = vld [vmem:[#allocation7 + $0x1b0] sm:$0xff]  ;;  %v305_v31 = vld [vmem:[#allocation7 + $0x1c8] sm:$0xff]  ;;  %v307_v32 = vld [vmem:[#allocation7 + $0x1d8] sm:$0xff] }
  0x61   :  { %v727_v33 = vpack.c.bf16 %v302_v30, %v300_v29  ;;  %v729_v34 = vpack.c.bf16 %v307_v32, %v305_v31  ;;  %v304_v35 = vld [vmem:[#allocation7 + $0x1c0] sm:$0xff]  ;;  %v306_v36 = vld [vmem:[#allocation7 + $0x1d0] sm:$0xff]  ;;  %v313_v38 = vld [vmem:[#allocation7 + $0x208] sm:$0xff] }
  0x62   :  { %692 = vmatpush1.bf16.msra.mxu0 %v691_v43  ;;  %v731_v37 = vpack.c.bf16 %v306_v36, %v304_v35  ;;  %v315_v39 = vld [vmem:[#allocation7 + $0x218] sm:$0xff]  ;;  %v312_v41 = vld [vmem:[#allocation7 + $0x200] sm:$0xff]  ;;  %v314_v42 = vld [vmem:[#allocation7 + $0x210] sm:$0xff] }
  0x63   :  { %694 = vmatprep.subr.bf16.mxu0 %v693_v44  ;;  %v737_v40 = vpack.c.bf16 %v315_v39, %v313_v38  ;;  %v739_v43 = vpack.c.bf16 %v314_v42, %v312_v41  ;;  %v309_v44 = vld [vmem:[#allocation7 + $0x1e8] sm:$0xff]  ;;  %v311_v45 = vld [vmem:[#allocation7 + $0x1f8] sm:$0xff]  ;;  %v308_v47 = vld [vmem:[#allocation7 + $0x1e0] sm:$0xff] }
  0x64   :  { %v733_v46 = vpack.c.bf16 %v311_v45, %v309_v44  ;;  %v310_v48 = vld [vmem:[#allocation7 + $0x1f0] sm:$0xff]  ;;  %v319_v51 = vld [vmem:[#allocation7 + $0x238] sm:$0xff]  ;;  %v316_v53 = vld [vmem:[#allocation7 + $0x220] sm:$0xff] }
  0x65   :  { %738 = vmatprep.subr.bf16.mxu1 %v737_v40  ;;  %v318_v54 = vld [vmem:[#allocation7 + $0x230] sm:$0xff]  ;;  %v496_v57 = vld [vmem:[#allocation8 + $0x88] sm:$0xff]  ;;  %v479_v8 = vld [vmem:[#allocation8] sm:$0xff] }
  0x66   :  { %696 = vmatpush1.bf16.msra.mxu0 %v695_v49  ;;  %740 = vmatpush1.bf16.msra.mxu1 %v739_v43  ;;  %v735_v49 = vpack.c.bf16 %v310_v48, %v308_v47  ;;  %v497_v12 = vld [vmem:[#allocation8 + $0x90] sm:$0xff]  ;;  %v498_v13 = vld [vmem:[#allocation8 + $0x98] sm:$0xff]  ;;  %v500_v23 = vld [vmem:[#allocation8 + $0xa8] sm:$0xff] }
  0x67   :  { %698 = vmatprep.subr.bf16.mxu0 %v697_v50  ;;  %v317_v50 = vld [vmem:[#allocation7 + $0x228] sm:$0xff]  ;;  %v749_v19 = vpack.c.bf16 %v498_v13, %v497_v12  ;;  %v481_v20 = vld [vmem:[#allocation8 + $0x10] sm:$0xff]  ;;  %v483_v26 = vld [vmem:[#allocation8 + $0x20] sm:$0xff] }
  0x68   :  { %v741_v52 = vpack.c.bf16 %v319_v51, %v317_v50  ;;  %v502_v29 = vld [vmem:[#allocation8 + $0xb8] sm:$0xff]  ;;  %v485_v32 = vld [vmem:[#allocation8 + $0x30] sm:$0xff]  ;;  %v504_v35 = vld [vmem:[#allocation8 + $0xc8] sm:$0xff] }
  0x69   :  { %v487_v38 = vld [vmem:[#allocation8 + $0x40] sm:$0xff]  ;;  %v488_v39 = vld [vmem:[#allocation8 + $0x48] sm:$0xff]  ;;  %v505_v40 = vld [vmem:[#allocation8 + $0xd0] sm:$0xff] }
  0x6a   :  { %700 = vmatpush1.bf16.msra.mxu0 %v699_v55  ;;  %v743_v55 = vpack.c.bf16 %v318_v54, %v316_v53  ;;  %742 = vmatprep.subr.bf16.mxu1 %v741_v52  ;;  %v506_v41 = vld [vmem:[#allocation8 + $0xd8] sm:$0xff]  ;;  %v763_v42 = vpack.c.bf16 %v488_v39, %v487_v38  ;;  %v489_v44 = vld [vmem:[#allocation8 + $0x50] sm:$0xff]  ;;  %v507_v47 = vld [vmem:[#allocation8 + $0xe0] sm:$0xff] }
  0x6b   :  { %702 = vmatprep.subr.bf16.mxu0 %v701_v56  ;;  %v495_v56 = vld [vmem:[#allocation8 + $0x80] sm:$0xff]  ;;  %v765_v43 = vpack.c.bf16 %v506_v41, %v505_v40  ;;  %v490_v45 = vld [vmem:[#allocation8 + $0x58] sm:$0xff]  ;;  %v508_v48 = vld [vmem:[#allocation8 + $0xe8] sm:$0xff] }
  0x6c   :  { %744 = vmatpush1.bf16.msra.mxu1 %v743_v55  ;;  %v745_v58 = vpack.c.bf16 %v496_v57, %v495_v56  ;;  %v491_v50 = vld [vmem:[#allocation8 + $0x60] sm:$0xff]  ;;  %v492_v51 = vld [vmem:[#allocation8 + $0x68] sm:$0xff]  ;;  %v509_v53 = vld [vmem:[#allocation8 + $0xf0] sm:$0xff] }
  0x6d   :  { %v771_v52 = vpack.c.bf16 %v492_v51, %v491_v50  ;;  %v510_v54 = vld [vmem:[#allocation8 + $0xf8] sm:$0xff]  ;;  %v493_v56 = vld [vmem:[#allocation8 + $0x70] sm:$0xff]  ;;  %v75_v59 = vld [vmem:[%s1048_s4 + $0x3] sm:$0x3] }
  0x6e   :  { %704 = vmatpush1.bf16.msra.mxu0 %v703_v61  ;;  %746 = vmatprep.subr.bf16.mxu1 %v745_v58  ;;  %v87_v61 = vsub.s32 0, %v1010_v60  ;;  %v773_v55 = vpack.c.bf16 %v510_v54, %v509_v53  ;;  %v494_v57 = vld [vmem:[#allocation8 + $0x78] sm:$0xff]  ;;  %v620_v60 = vld [vmem:[%s1048_s4 + $0x5] ss:$0 sm:$0xff] }
  0x6f   :  { %706 = vmatprep.subr.bf16.mxu0 %v705_v62  ;;  %v74_v62 = vld [vmem:[%s1048_s4] sm:$0x7]  ;;  %v775_v58 = vpack.c.bf16 %v494_v57, %v493_v56 }
  0x70   :  { %v88_v0 = vrot.slane %v74_v62, %v87_v61  ;;  %v92_v2 = vrot.slane %v74_v62, %v91_v63  ;;  %v96_v6 = vrot.slane %v74_v62, %v95_v1  ;;  %v324_v62 = vrot.slane %v75_v59, %v87_v61 }
  0x72   :  { %708 = vmatpush1.bf16.msra.mxu0 %v707_v3 }
  0x73   :  { %710 = vmatprep.subr.bf16.mxu0 %v709_v4 }
  0x76   :  { %712 = vmatpush1.bf16.msra.mxu0 %v711_v9  ;;  %v480_v9 = vld [vmem:[#allocation8 + $0x8] sm:$0xff] }
  0x77   :  { %714 = vmatprep.subr.bf16.mxu0 %v713_v10  ;;  %v747_v17 = vpack.c.bf16 %v480_v9, %v479_v8 }
  0x7a   :  { %716 = vmatpush1.bf16.msra.mxu0 %v715_v15 }
  0x7b   :  { %718 = vmatprep.subr.bf16.mxu0 %v717_v16 }
  0x7e   :  { %720 = vmatpush1.bf16.msra.mxu0 %v719_v21  ;;  %v482_v21 = vld [vmem:[#allocation8 + $0x18] sm:$0xff] }
  0x7f   :  { %722 = vmatprep.subr.bf16.mxu0 %v721_v22  ;;  %v499_v22 = vld [vmem:[#allocation8 + $0xa0] sm:$0xff]  ;;  %v751_v24 = vpack.c.bf16 %v482_v21, %v481_v20 }
  0x80   :  { %v753_v25 = vpack.c.bf16 %v500_v23, %v499_v22 }
  0x82   :  { %724 = vmatpush1.bf16.msra.mxu0 %v723_v27  ;;  %v484_v27 = vld [vmem:[#allocation8 + $0x28] sm:$0xff] }
  0x83   :  { %726 = vmatprep.subr.bf16.mxu0 %v725_v28  ;;  %v501_v28 = vld [vmem:[#allocation8 + $0xb0] sm:$0xff]  ;;  %v755_v30 = vpack.c.bf16 %v484_v27, %v483_v26 }
  0x84   :  { %v757_v31 = vpack.c.bf16 %v502_v29, %v501_v28 }
  0x86   :  { %728 = vmatpush1.bf16.msra.mxu0 %v727_v33  ;;  %v486_v33 = vld [vmem:[#allocation8 + $0x38] sm:$0xff] }
  0x87   :  { %730 = vmatprep.subr.bf16.mxu0 %v729_v34  ;;  %v503_v34 = vld [vmem:[#allocation8 + $0xc0] sm:$0xff]  ;;  %v759_v36 = vpack.c.bf16 %v486_v33, %v485_v32 }
  0x8a   :  { %732 = vmatpush1.bf16.msra.mxu0 %v731_v37  ;;  %v761_v37 = vpack.c.bf16 %v504_v35, %v503_v34 }
  0x8b   :  { %734 = vmatprep.subr.bf16.mxu0 %v733_v46  ;;  %v767_v46 = vpack.c.bf16 %v490_v45, %v489_v44 }
  0x8e   :  { %736 = vmatpush1.bf16.msra.mxu0 %v735_v49  ;;  %v769_v49 = vpack.c.bf16 %v508_v48, %v507_v47 }
 0x125   :  { %v170_v3 = vpop.f32.mrb[0].mxu1 }
 0x126   :  { %v171_v4 = vadd.f32 %v170_v3, %v88_v0  ;;  %v172_v5 = vpop.f32.mrb[1].mxu1  ;;  %v328_v0 = vrot.slane %v75_v59, %v91_v63 }
 0x127   :  { %v173_v7 = vadd.f32 %v172_v5, %v92_v2 }
 0x128   :  { %v245_v14 = vmax.f32 %v171_v4, 0.0 }
 0x129   :  { %v241_v10 = vpop.f32.mrb[2].mxu1  ;;  %v246_v11 = vmax.f32 %v173_v7, 0.0 }
 0x12a   :  { %v242_v15 = vadd.f32 %v241_v10, %v96_v6  ;;  %v665_v16 = vpop.f32.mrb[3].mxu1 }
 0x12b   :  { %399 = vmatprep.mubr.f32.mxu0 %v246_v11  ;;  %v928_v11 = vmov 4  }
 0x12c   :  { %v247_v18 = vmax.f32 %v242_v15, 0.0  ;;  %400 = vmatmul.mubr.f32.vlgmr.msra.gmra.mrb[0].mxu0 %v245_v14  ;;  %796 = vset.pattern.permute.xlu0 %v928_v11 }
 0x12e   :  { %619 = vmatmul.mubr.msk.f32.vlgmr.msra.gmra.mrb[4].mxu1 %vm331_vm2, %v247_v18 }
 0x12f   :  { %748 = vmatpush3.bf16.msra.mxu1 %v747_v17 }
 0x130   :  { %750 = vmatprep.subr.bf16.mxu1 %v749_v19 }
 0x133   :  { %752 = vmatpush3.bf16.msra.mxu1 %v751_v24 }
 0x134   :  { %754 = vmatprep.subr.bf16.mxu1 %v753_v25 }
 0x137   :  { %756 = vmatpush3.bf16.msra.mxu1 %v755_v30 }
 0x138   :  { %758 = vmatprep.subr.bf16.mxu1 %v757_v31 }
 0x13b   :  { %760 = vmatpush3.bf16.msra.mxu1 %v759_v36 }
 0x13c   :  { %762 = vmatprep.subr.bf16.mxu1 %v761_v37 }
 0x13f   :  { %764 = vmatpush3.bf16.msra.mxu1 %v763_v42 }
 0x140   :  { %766 = vmatprep.subr.bf16.mxu1 %v765_v43 }
 0x143   :  { %768 = vmatpush3.bf16.msra.mxu1 %v767_v46 }
 0x144   :  { %770 = vmatprep.subr.bf16.mxu1 %v769_v49 }
 0x147   :  { %772 = vmatpush3.bf16.msra.mxu1 %v771_v52 }
 0x148   :  { %774 = vmatprep.subr.bf16.mxu1 %v773_v55 }
 0x14b   :  { %776 = vmatpush3.bf16.msra.mxu1 %v775_v58 }
 0x1ff   :  { %v401_v1 = vpop.f32.mrb[0].mxu0 }
 0x200   :  { %v402_v2 = vadd.f32 %v401_v1, %v324_v62  ;;  %v403_v3 = vpop.f32.mrb[1].mxu0 }
 0x201   :  { %v404_v4 = vadd.f32 %v403_v3, %v328_v0  ;;  %v472_v5 = vpop.f32.mrb[4].mxu1 }
 0x202   :  { %v473_v6 = vadd.f32 %v472_v5, %v402_v2  ;;  %v474_v7 = vpop.f32.mrb[5].mxu1 }
 0x203   :  { %v475_v8 = vadd.f32 %v474_v7, %v404_v4 }
 0x204   :  { %v477_v10 = vmax.f32 %v473_v6, 0.0 }
 0x205   :  { %v478_v9 = vmax.f32 %v475_v8, 0.0 }
 0x207   :  { %581 = vmatprep.mubr.f32.mxu1 %v478_v9 }
 0x208   :  { %582 = vmatmul.mubr.f32.vlgmr.msra.gmra.mrb[6].mxu1 %v477_v10 }
 0x2db   :  { %v656_v12 = vpop.f32.mrb[6].mxu1 }
 0x2dc   :  { %v657_v61 = vpop.f32.mrb[7].mxu1 }
 0x2dd   :  { %v658_v63 = vadd.f32 %v657_v61, %v656_v12 }
 0x2df   :  { %v584_v13 = vadd.f32 %v658_v63, %v620_v60 }
 0x2e1   :  { %v588_v14 = vsel %vm587_vm3, %v584_v13, 0.0 }
 0x2e2   :  { %589 = vadd.xlane.f32.xlu0 %v588_v14 }
 0x2f8   :  { %594 = vperm.xlu0 %796, %v584_v13  }
 0x36f   :  { %v590_v15 = vpop.xlane.xlu0 %589 }
 0x370   :  { %v591_v17 = vmul.f32 0.25, %v590_v15 }
 0x377   :  { %v595_v16 = vpop.permute.xlu0 %594 }
 0x378   :  { %v597_v18 = vadd.f32 %v595_v16, %v584_v13 }
 0x37a   :  { %v598_v19 = vsub.f32 %v597_v18, %v591_v17 }
 0x37c   :  { %599 = vst [vmem:[#allocation10] sm:$0xff] %v598_v19 }
 0x37d   :  { %896 = shalt.err (!%p893_p8)
}
 0x37e   :  { %s897_s27 = scalar_lea.hbm %s1049_s5, 128 }
 0x37f   :  { %p898_p9 = scmp.ne.s32.totalorder %s1049_s5, %s897_s27  ;;  %p901_p10 = scmp.lt.u32.totalorder %s897_s27, %s1049_s5 }
 0x381   :  { %p903_p11 = pnand %p901_p10, %p898_p9 }
 0x383   :  { %906 = shalt.err (!%p903_p11)
}
 0x384   :  { %609 = dma.vmem_to_hbm [thread:$0]  %s607_s24, 128, %s1049_s5, [#allocation4]  }
 0x385   :  { %913 = dma.done.wait [#allocation4], 128  }
 0x386   :  { %914 = vsyncadd [#allocation4], 4294967168 }
 0x387   :  { %613 = vsyncpa [#allocation3], 1 }
 0x388   :  { %614 = vsyncpa [#allocation6], 1 }
 0x389   :  { %615 = vsyncpa [#allocation9], 1 }
 0x38a   :  { %616 = vsyncpa [#allocation4], 1 }

</bundles_post_ra>
